<compile_context>
chip_gen: v7x
topology: tpu7x:2x2x1
jax: 0.10.0
libtpu: 0.0.40
codegen_flags: <defaults>
</compile_context>

<pallas_src>
import functools

import numpy as np
import jax
import jax.numpy as jnp
from jax.experimental import pallas as pl
from jax.experimental.pallas import tpu as pltpu

_LANES = 128
_ROW = 2 * _LANES              # 256 scalars / row = 128 interleaved complex values
_MIN_CHUNK = 8 * _ROW          # one (8, 256) tile = 2048 scalars
_MAX_TILE_ROWS = 2048          # 2 MiB f32 per operand per block


def _round_up(a, b):
    return -(-a // b) * b


def _dc_ps_kernel(x1_ref, x2_ref, y1_ref, y2_ref, *, m11, m12, m21, m22,
                  use_imag):
    """Folded coupler + phase shifts on lane-interleaved [re, im] data.

    Refs are (tile_r, 256) blocks: even lanes hold real parts, odd lanes hold
    imaginary parts.  Real matrix coefficients act identically on both lane
    types, so no de-interleave is needed for them.  Imaginary coefficients
    (generic path, statically skipped for the module's 1.5*pi phase) use a
    multiply-by-i built from two lane rolls and a parity select.
    """
    x1 = x1_ref[...].astype(jnp.float32)
    x2 = x2_ref[...].astype(jnp.float32)

    y1 = m11[0] * x1 + m12[0] * x2
    y2 = m21[0] * x1 + m22[0] * x2

    if use_imag:  # trace-time switch; not taken for phase = 1.5*pi
        lane = jax.lax.broadcasted_iota(jnp.int32, x1.shape, dimension=1)
        even = (lane & 1) == 0
        n = x1.shape[-1]

        def mul_i(x):
            # multiply-by-i on interleaved pairs: out[2j] = -x[2j+1], out[2j+1] = x[2j]
            left = pltpu.roll(x, n - 1, axis=-1)   # out[l] = x[l+1]
            right = pltpu.roll(x, 1, axis=-1)      # out[l] = x[l-1]
            return jnp.where(even, -left, right)

        u1, u2 = mul_i(x1), mul_i(x2)
        y1 = y1 + m11[1] * u1 + m12[1] * u2
        y2 = y2 + m21[1] * u1 + m22[1] * u2

    y1_ref[...] = y1.astype(y1_ref.dtype)
    y2_ref[...] = y2.astype(y2_ref.dtype)


def directional_coupler_2x2_with_phase_shift(x1, x2,
                                             upper_trans=float(np.sqrt(0.5))):
    """x1, x2: (..., 2) arrays of complex values stored as [real, imag].

    Returns (y1, y2) with the same shape, matching the PyTorch module's
    forward pass applied elementwise to each complex value.
    """
    assert x1.shape == x2.shape and x1.shape[-1] == 2
    assert 0.0 < upper_trans < 1.0, \
        "[E] Upper arm transmission factor must within (0,1)"

    t = float(upper_trans)
    k = float(np.sqrt(1.0 - t * t))
    phase = 1.5 * np.pi
    cr, ci = float(np.cos(phase)), float(np.sin(phase))   # cr ~ -1.8e-16, ci = -1
    # Fold phaseshift(x2) -> coupler -> phaseshift(y2) into one complex 2x2.
    m11 = (t, 0.0)
    m12 = (-k * ci, k * cr)
    m21 = (-k * ci, k * cr)
    m22 = (t * (cr * cr - ci * ci), 2.0 * t * cr * ci)
    # Imaginary residues of ~1e-16 (float error of cos(1.5*pi)) are far below
    # f32 resolution -> drop them and take the roll-free path (review opt #6).
    use_imag = any(abs(im) > 1e-9 for _, im in (m11, m12, m21, m22))

    orig_shape = x1.shape
    in_dtype = x1.dtype
    # Preserve f32 / bf16 natively; anything else is computed/returned in f32.
    compute_dtype = in_dtype if in_dtype in (jnp.float32, jnp.bfloat16) else jnp.float32
    x1 = x1.astype(compute_dtype)
    x2 = x2.astype(compute_dtype)

    n = int(np.prod(orig_shape))           # total scalars (re+im interleaved)
    n_pad = _round_up(n, _MIN_CHUNK)
    rows = n_pad // _ROW

    def to_rows(x):
        x = jnp.ravel(x)                   # free: (..., 2) is contiguous
        if n_pad != n:                     # only copies when padding is needed
            x = jnp.pad(x, (0, n_pad - n))
        return x.reshape(rows, _ROW)

    X1, X2 = to_rows(x1), to_rows(x2)

    # Biggest tile that fits comfortably in scoped VMEM, but keep >= 2 grid
    # blocks when there is enough data so v7x megacore sharding has work for
    # both TensorCores.  rows and tile_r are multiples of 8, so partial edge
    # blocks stay sublane aligned.
    tile_r = min(_MAX_TILE_ROWS, _round_up(pl.cdiv(rows, 2), 8))
    tile_r = max(8, min(tile_r, rows))
    grid = (pl.cdiv(rows, tile_r),)        # partial last block allowed
    spec = pl.BlockSpec((tile_r, _ROW), lambda i: (i, 0))

    kernel = functools.partial(_dc_ps_kernel, m11=m11, m12=m12, m21=m21,
                               m22=m22, use_imag=use_imag)

    itemsize = jnp.dtype(compute_dtype).itemsize
    cost = pl.CostEstimate(flops=6 * n_pad, transcendentals=0,
                           bytes_accessed=4 * n_pad * itemsize)

    Y1, Y2 = pl.pallas_call(
        kernel,
        out_shape=(jax.ShapeDtypeStruct((rows, _ROW), compute_dtype),
                   jax.ShapeDtypeStruct((rows, _ROW), compute_dtype)),
        grid=grid,
        in_specs=[spec, spec],
        out_specs=(spec, spec),
        compiler_params=pltpu.CompilerParams(
            dimension_semantics=("parallel",),
            vmem_limit_bytes=32 * 1024 * 1024),
        cost_estimate=cost,
    )(X1, X2)

    def from_rows(y):
        y = y.reshape(-1)                  # free contiguous reshape
        if n_pad != n:
            y = y[:n]
        return y.reshape(orig_shape)

    return from_rows(Y1), from_rows(Y2)


# ------------------------------ reference -------------------------------- #
def _complex_mult(a, b):
    ar, ai = a[..., 0], a[..., 1]
    br, bi = b[..., 0], b[..., 1]
    return jnp.stack([ar * br - ai * bi, ar * bi + ai * br], axis=-1)


def _reference(x1, x2, upper_trans=float(np.sqrt(0.5))):
    t = float(upper_trans)
    k = float(np.sqrt(1.0 - upper_trans ** 2))
    phase = np.pi * 1.5
    ps = jnp.array([np.cos(phase), np.sin(phase)], jnp.float32)
    tm = jnp.array([[[t, 0.0], [0.0, k]],
                    [[0.0, k], [t, 0.0]]], jnp.float32)       # (2, 2, 2)
    x2 = _complex_mult(x2, ps)                                # phaseshifter270
    y1 = _complex_mult(tm[0, 0], x1) + _complex_mult(tm[0, 1], x2)
    y2 = _complex_mult(tm[1, 0], x1) + _complex_mult(tm[1, 1], x2)
    y2 = _complex_mult(y2, ps)                                # phaseshifter270
    return y1, y2


if __name__ == "__main__":
    key = jax.random.PRNGKey(0)
    k1, k2, k3, k4 = jax.random.split(key, 4)

    # Aligned case: zero-copy layout path, 2-block "parallel" grid.
    shape_a = (4, 16, 64, 2)
    x1a = jax.random.normal(k1, shape_a, dtype=jnp.float32)
    x2a = jax.random.normal(k2, shape_a, dtype=jnp.float32)
    y1a, y2a = jax.block_until_ready(
        directional_coupler_2x2_with_phase_shift(x1a, x2a))
    r1a, r2a = _reference(x1a, x2a)
    assert y1a.shape == shape_a and y2a.shape == shape_a
    assert jnp.allclose(y1a, r1a, atol=1e-5, rtol=1e-5), "y1 mismatch (aligned)"
    assert jnp.allclose(y2a, r2a, atol=1e-5, rtol=1e-5), "y2 mismatch (aligned)"

    # Non-aligned case: exercises the minimal pad/slice tail path.
    shape_b = (3, 5, 2)
    x1b = jax.random.normal(k3, shape_b, dtype=jnp.float32)
    x2b = jax.random.normal(k4, shape_b, dtype=jnp.float32)
    y1b, y2b = jax.block_until_ready(
        directional_coupler_2x2_with_phase_shift(x1b, x2b))
    r1b, r2b = _reference(x1b, x2b)
    assert y1b.shape == shape_b and y2b.shape == shape_b
    assert jnp.allclose(y1b, r1b, atol=1e-5, rtol=1e-5), "y1 mismatch (tail)"
    assert jnp.allclose(y2b, r2b, atol=1e-5, rtol=1e-5), "y2 mismatch (tail)"

    print("KERNEL_OK")
</pallas_src>

<mosaic_0001>
module attributes {stable_mosaic.version = 11 : i64} {
  func.func @_dc_ps_kernel(%arg0: i32, %arg1: memref<16x256xf32, #tpu.memory_space<vmem>>, %arg2: memref<16x256xf32, #tpu.memory_space<vmem>>, %arg3: memref<16x256xf32, #tpu.memory_space<vmem>>, %arg4: memref<16x256xf32, #tpu.memory_space<vmem>>) attributes {dimension_semantics = [#tpu.dimension_semantics<parallel>], iteration_bounds = array<i64: 2>, scalar_prefetch = 0 : i64, scratch_operands = 0 : i64, tpu.core_type = #tpu.core_type<tc>, window_params = [{transform_indices = @transform_0, window_bounds = array<i64: 16, 256>}, {transform_indices = @transform_1, window_bounds = array<i64: 16, 256>}, {transform_indices = @transform_2, window_bounds = array<i64: 16, 256>}, {transform_indices = @transform_3, window_bounds = array<i64: 16, 256>}]} {
    %c0 = arith.constant 0 : index
    %c0_0 = arith.constant 0 : index
    %0 = vector.load %arg1[%c0, %c0_0] : memref<16x256xf32, #tpu.memory_space<vmem>>, vector<16x256xf32>
    %c0_1 = arith.constant 0 : index
    %c0_2 = arith.constant 0 : index
    %1 = vector.load %arg2[%c0_1, %c0_2] : memref<16x256xf32, #tpu.memory_space<vmem>>, vector<16x256xf32>
    %cst = arith.constant 0.707106769 : f32
    %2 = vector.broadcast %cst : f32 to vector<16x256xf32>
    %3 = arith.mulf %2, %0 : vector<16x256xf32>
    %cst_3 = arith.constant 0.707106769 : f32
    %4 = vector.broadcast %cst_3 : f32 to vector<16x256xf32>
    %5 = arith.mulf %4, %1 : vector<16x256xf32>
    %6 = arith.addf %3, %5 : vector<16x256xf32>
    %cst_4 = arith.constant 0.707106769 : f32
    %7 = vector.broadcast %cst_4 : f32 to vector<16x256xf32>
    %8 = arith.mulf %7, %0 : vector<16x256xf32>
    %cst_5 = arith.constant -0.707106769 : f32
    %9 = vector.broadcast %cst_5 : f32 to vector<16x256xf32>
    %10 = arith.mulf %9, %1 : vector<16x256xf32>
    %11 = arith.addf %8, %10 : vector<16x256xf32>
    %c0_6 = arith.constant 0 : index
    %c0_7 = arith.constant 0 : index
    %12 = vector.load %arg3[%c0_6, %c0_7] : memref<16x256xf32, #tpu.memory_space<vmem>>, vector<16x256xf32>
    tpu.vector_store %arg3[%c0_6, %c0_7], %6 {strides = array<i32>} : memref<16x256xf32, #tpu.memory_space<vmem>>, vector<16x256xf32>,
    %c0_8 = arith.constant 0 : index
    %c0_9 = arith.constant 0 : index
    %13 = vector.load %arg4[%c0_8, %c0_9] : memref<16x256xf32, #tpu.memory_space<vmem>>, vector<16x256xf32>
    tpu.vector_store %arg4[%c0_8, %c0_9], %11 {strides = array<i32>} : memref<16x256xf32, #tpu.memory_space<vmem>>, vector<16x256xf32>,
    return
  }
  func.func @transform_0(%arg0: i32) -> (i32, i32) {
    %c0_i32 = arith.constant 0 : i32
    %c0_i32_0 = arith.constant 0 : i32
    return %arg0, %c0_i32 : i32, i32
  }
  func.func @transform_1(%arg0: i32) -> (i32, i32) {
    %c0_i32 = arith.constant 0 : i32
    %c0_i32_0 = arith.constant 0 : i32
    return %arg0, %c0_i32 : i32, i32
  }
  func.func @transform_2(%arg0: i32) -> (i32, i32) {
    %c0_i32 = arith.constant 0 : i32
    %c0_i32_0 = arith.constant 0 : i32
    return %arg0, %c0_i32 : i32, i32
  }
  func.func @transform_3(%arg0: i32) -> (i32, i32) {
    %c0_i32 = arith.constant 0 : i32
    %c0_i32_0 = arith.constant 0 : i32
    return %arg0, %c0_i32 : i32, i32
  }
}

</mosaic_0001>

<bundles_post_ra>
// kernel: tpu_custom_call.1
= control target key start
LH: loop header
LB: loop body
LE: loop exit
PB: predicated region body
PF: predicated region fallthrough
CT: control target
= control target key end

     0   :  { %9 = vsyncpa [#allocation3], 0  ;;  %s1011_s0 = inlined_call_operand.hbm [shape: f32[32,256], index: 0, kind: input, shape index: {}]   ;;  %s1012_s1 = inlined_call_operand.hbm [shape: f32[32,256], index: 1, kind: input, shape index: {}]   ;;  %s1013_s2 = inlined_call_operand.hbm [shape: f32[32,256], index: 2, kind: output, shape index: {0}]   ;;  %s1014_s3 = inlined_call_operand.hbm [shape: f32[32,256], index: 3, kind: output, shape index: {1}]  }
   0x1   :  { %11 = vsyncpa [#allocation3 + $0x1], 0 }
   0x2   :  { %12 = vsyncpa [#allocation6], 0 }
   0x3   :  { %14 = vsyncpa [#allocation6 + $0x1], 0 }
   0x4   :  { %15 = vsyncpa [#allocation4], 0 }
   0x5   :  { %17 = vsyncpa [#allocation4 + $0x1], 0 }
   0x6   :  { %18 = vsyncpa [#allocation9], 0 }
   0x7   :  { %20 = vsyncpa [#allocation9 + $0x1], 0  ;;  %s733_s12 = smov 0   ;;  %s735_s13 = smov 0  }
   0x8   :  { %s737_s14 = smov 0   ;;  %s739_s15 = smov 0  }
   0x9 LB: > { %s754_s16 = sadd.s32 4294967295, %s703_s15   ;;  %s447_s17 = sadd.s32 4294967294, %s703_s15   ;;  %s703_s15 = sphi %s739_s15, %s1030_s15   ;;  %s699_s14 = sphi %s737_s14, %s1029_s14   ;;  %s695_s13 = sphi %s735_s13, %s1028_s13   ;;  %s691_s12 = sphi %s733_s12, %s1027_s12  }
   0xa   : > { %s758_s18 = sadd.s32 1, %s703_s15   ;;  %s33_s19 = sadd.s32 1, %s699_s14 }
   0xb   : > { %s30_s20 = ssub.s32 %s703_s15, %s758_s18  ;;  %p40_p0 = scmp.ne.s32.totalorder %s699_s14, %s695_s13 }
   0xc   : > { %p31_p1 = scmp.eq.s32.totalorder %s30_s20, 0  ;;  %p41_p2 = scmp.eq.s32.totalorder %s703_s15, 0 }
   0xd   : > { %p46_p3 = scmp.ne.s32.totalorder %s695_s13, %s691_s12  ;;  %p47_p4 = scmp.eq.s32.totalorder %s754_s16, 0 }
   0xe   : > { %s770_s21 = scalar_select %p31_p1, %s699_s14, %s33_s19  }
   0xf   : > { %p772_p5 = por %p41_p2, %p40_p0  ;;  %p776_p6 = por %p47_p4, %p46_p3 }
  0x10   : > { %p96_p7 = scmp.eq.s32.totalorder %s754_s16, 1  ;;  %p102_p8 = scmp.eq.s32.totalorder %s447_s17, 1 }
  0x11   : > { %s1018_s23 = scalar_select %p776_p6, 1, 0 }
  0x12   : > { %p503_p10 = scmp.lt.s32.totalorder %s703_s15, 2  ;;  %p783_p11 = por %p96_p7, %p40_p0 }
  0x13   : > { %p787_p12 = por %p102_p8, %p46_p3  ;;  %s792_s26 = sand.u32 1, %s699_s14  }
  0x14   : > { %s1019_s24 = scalar_select %p783_p11, 1, 0 }
  0x15   : > { %s1020_s25 = scalar_select %p787_p12, 1, 0 }
  0x16   : > { %s474_s27 = sshll.u32 %s703_s15, 9  ;;  %s450_s28 = sshll.u32 %s792_s26, 5 }
  0x17   : > { %s801_s4 = scalar_lea.hbm %s1011_s0, %s474_s27  ;;  %s152_s5 = scalar_lea.vmem [#allocation2], %s450_s28 }
  0x18   : > { %s160_s6 = sshll.u32 %s152_s5, 4  ;;  %p807_p13 = pnand %p503_p10, %p772_p5  ;;  %s811_s6 = int_to_ptr.vmem [resolvable:$true] %s160_s6 }
  0x19   : > { %s149_s8 = scalar_lea.sflag [#allocation3], %s792_s26  ;;  %s541_s9 = scalar_lea.hbm %s801_s4, 512 }
  0x1a   : > { %p542_p0 = scmp.ne.s32.totalorder %s801_s4, %s541_s9  ;;  %p543_p1 = pneg %p807_p13 }
  0x1b   : > { %s546_s17 = scalar_lea.hbm %s1011_s0, 1024  ;;  %p547_p4 = scmp.lt.u32.totalorder %s801_s4, %s1011_s0 }
  0x1c   : > { %p544_p2 = pnand %p543_p1, %p542_p0  ;;  %p548_p5 = scmp.lt.u32.totalorder %s546_s17, %s541_s9 }
  0x1d   : > { %p550_p8 = scmp.lt.u32.totalorder %s541_s9, %s801_s4 }
  0x1e   : > { %p545_p3 = pneg %p544_p2  ;;  %p549_p7 = por %p548_p5, %p547_p4 }
  0x20   : > { %p551_p10 = por %p550_p8, %p549_p7 }
  0x22   : > { %p552_p9 = pnand %p551_p10, %p545_p3 }
  0x24   : > { %555 = shalt.err (!%p552_p9)
}
  0x25   : > { %s556_s22 = scalar_lea.vmem %s811_s6, 512  ;;  %s705_s29 = smov [#allocation2]  }
  0x26   : > { %p557_p0 = scmp.ne.s32.totalorder %s811_s6, %s556_s22  ;;  %s561_s30 = sshll.u32 %s705_s29, 4  ;;  %s562_s30 = int_to_ptr.vmem [resolvable:$false] %s561_s30 }
  0x27   : > { %s563_s5 = scalar_lea.vmem %s562_s30, 1024  ;;  %p564_p11 = scmp.lt.s32.totalorder %s811_s6, %s562_s30 }
  0x28   : > { %p559_p2 = pnand %p557_p0, %p543_p1  ;;  %p565_p4 = scmp.lt.s32.totalorder %s563_s5, %s556_s22 }
  0x2a   : > { %p560_p12 = pneg %p559_p2  ;;  %p566_p5 = por %p565_p4, %p564_p11 }
  0x2c   : > { %p567_p7 = pnand %p566_p5, %p560_p12 }
  0x2e   : > { %570 = shalt.err (!%p567_p7)
}
  0x2f   : > { %s706_s9 = smov 256   ;;  %s707_s10 = smov 16  }
  0x30   : > { %492 = dma.hbm_to_vmem [thread:$0]  (!%p807_p13), %s801_s4, 512, %s811_s6, %s149_s8, %s706_s9, %s706_s9, %s707_s10  }
  0x31   : > { %p458_p9 = scmp.ge.s32.totalorder %s703_s15, 1  ;;  %p190_p11 = scmp.lt.s32.totalorder %s703_s15, 3 }
  0x32   : > { %s855_s20 = scalar_lea.hbm %s1012_s1, %s474_s27  ;;  %s174_s22 = scalar_lea.vmem [#allocation5], %s450_s28 }
  0x33   : > { %p846_p12 = pnand %p458_p9, %p190_p11  ;;  %s182_s29 = sshll.u32 %s174_s22, 4  ;;  %s859_s29 = int_to_ptr.vmem [resolvable:$true] %s182_s29 }
  0x34   : > { %s171_s4 = scalar_lea.sflag [#allocation6], %s792_s26  ;;  %s571_s6 = scalar_lea.hbm %s855_s20, 512 }
  0x35   : > { %p572_p3 = scmp.ne.s32.totalorder %s855_s20, %s571_s6  ;;  %s576_s27 = scalar_lea.hbm %s1012_s1, 1024 }
  0x36   : > { %p577_p0 = scmp.lt.u32.totalorder %s855_s20, %s1012_s1  ;;  %p578_p2 = scmp.lt.u32.totalorder %s576_s27, %s571_s6 }
  0x37   : > { %p574_p8 = pnand %p572_p3, %p543_p1  ;;  %p580_p5 = scmp.lt.u32.totalorder %s571_s6, %s855_s20 }
  0x38   : > { %p579_p4 = por %p578_p2, %p577_p0 }
  0x39   : > { %p575_p10 = pneg %p574_p8 }
  0x3a   : > { %p581_p7 = por %p580_p5, %p579_p4 }
  0x3c   : > { %p582_p9 = pnand %p581_p7, %p575_p10 }
  0x3e   : > { %585 = shalt.err (!%p582_p9)
}
  0x3f   : > { %s586_s28 = scalar_lea.vmem %s859_s29, 512  ;;  %s708_s19 = smov [#allocation5]  }
  0x40   : > { %p587_p11 = scmp.ne.s32.totalorder %s859_s29, %s586_s28  ;;  %s591_s22 = sshll.u32 %s708_s19, 4  ;;  %s592_s22 = int_to_ptr.vmem [resolvable:$false] %s591_s22 }
  0x41   : > { %s593_s8 = scalar_lea.vmem %s592_s22, 1024  ;;  %p594_p6 = scmp.lt.s32.totalorder %s859_s29, %s592_s22 }
  0x42   : > { %p589_p3 = pnand %p587_p11, %p543_p1  ;;  %p595_p0 = scmp.lt.s32.totalorder %s593_s8, %s586_s28 }
  0x44   : > { %p590_p8 = pneg %p589_p3  ;;  %p596_p2 = por %p595_p0, %p594_p6 }
  0x46   : > { %p597_p4 = pnand %p596_p2, %p590_p8 }
  0x48   : > { %600 = shalt.err (!%p597_p4)
}
  0x49   : > { %495 = dma.hbm_to_vmem [thread:$0]  (!%p807_p13), %s855_s20, 512, %s859_s29, %s171_s4, %s706_s9, %s706_s9, %s707_s10  }
  0x4a   : > { %194 = sbr.rel (%p846_p12) target bundleno = 137 (0x89), region = 28  ;;  %s893_s6 = sand.u32 (!%p846_p12), 1, %s695_s13  }
  0x4b   : > { %s459_s30 = sshll.u32 (!%p846_p12), %s893_s6, 5  ;;  %s197_s27 = scalar_lea.sflag (!%p846_p12), [#allocation3], %s893_s6 }
  0x4c   : > { %s200_s7 = scalar_lea.vmem (!%p846_p12), [#allocation2], %s459_s30  ;;  %p1023_p6 = scmp.ne.s32.totalorder (!%p846_p12), %s1018_s23, 0 }
  0x51   : > { %674 = dma.done.wait (%p1023_p6), %s197_s27, 512  }
  0x52   : > { %676 = vsyncadd (%p1023_p6), %s197_s27, 4294966784  ;;  %s206_s26 = scalar_lea.sflag [#allocation6], %s893_s6  ;;  %s209_s9 = scalar_lea.vmem [#allocation5], %s459_s30 }
  0x53   : > { %678 = dma.done.wait (%p1023_p6), %s206_s26, 512  }
  0x54   : > { %680 = vsyncadd (%p1023_p6), %s206_s26, 4294966784  ;;  %s906_s10 = scalar_lea.vmem [#allocation7], %s459_s30  ;;  %v246_v0 = vld [vmem:[%s200_s7] sm:$0xff]  ;;  %v247_v2 = vld [vmem:[%s200_s7 + $0x8] sm:$0xff]  ;;  %s909_s20 = scalar_lea.vmem [#allocation8], %s459_s30 }
  0x55   : > { %s302_s11 = sshll.u32 %s906_s10, 4  ;;  %v250_v1 = vld [vmem:[%s209_s9] sm:$0xff]  ;;  %s319_s29 = sshll.u32 %s909_s20, 4  ;;  %v254_v3 = vmul.f32 0.70710677, %v246_v0  ;;  %v251_v5 = vld [vmem:[%s209_s9 + $0x8] sm:$0xff]  ;;  %s913_s11 = int_to_ptr.vmem [resolvable:$true] %s302_s11  ;;  %s916_s29 = int_to_ptr.vmem [resolvable:$true] %s319_s29 }
  0x56   : > { %s478_s4 = sshll.u32 %s754_s16, 9  ;;  %v258_v4 = vmul.f32 0.70710677, %v250_v1  ;;  %v248_v6 = vld [vmem:[%s200_s7 + $0x10] sm:$0xff]  ;;  %v255_v7 = vmul.f32 0.70710677, %v247_v2 }
  0x57   : > { %v259_v8 = vmul.f32 0.70710677, %v251_v5  ;;  %v252_v9 = vld [vmem:[%s209_s9 + $0x10] sm:$0xff]  ;;  %v249_v10 = vld [vmem:[%s200_s7 + $0x18] sm:$0xff]  ;;  %v256_v12 = vmul.f32 0.70710677, %v248_v6  ;;  %s923_s17 = scalar_lea.hbm %s1013_s2, %s478_s4  ;;  %s932_s22 = scalar_lea.hbm %s1014_s3, %s478_s4 }
  0x58   : > { %v262_v11 = vadd.f32 %v258_v4, %v254_v3  ;;  %v260_v13 = vmul.f32 0.70710677, %v252_v9  ;;  %v253_v14 = vld [vmem:[%s209_s9 + $0x18] sm:$0xff]  ;;  %v257_v16 = vmul.f32 0.70710677, %v249_v10  ;;  %s283_s8 = scalar_lea.sflag [#allocation4], %s893_s6 }
  0x59   : > { %v263_v15 = vadd.f32 %v259_v8, %v255_v7  ;;  %v261_v17 = vmul.f32 0.70710677, %v253_v14  ;;  %v266_v18 = vmul.f32 -0.70710677, %v250_v1  ;;  %v267_v20 = vmul.f32 -0.70710677, %v251_v5 }
  0x5a   : > { %274 = vst [vmem:[%s906_s10] sm:$0xff] %v262_v11  ;;  %v264_v19 = vadd.f32 %v260_v13, %v256_v12  ;;  %v268_v21 = vmul.f32 -0.70710677, %v252_v9  ;;  %v269_v22 = vmul.f32 -0.70710677, %v253_v14  ;;  %s601_s30 = scalar_lea.vmem %s913_s11, 512  ;;  %p1024_p1 = scmp.ne.s32.totalorder %s1019_s24, 0 }
  0x5b   : > { %275 = vst [vmem:[%s906_s10 + $0x8] sm:$0xff] %v263_v15  ;;  %v265_v23 = vadd.f32 %v261_v17, %v257_v16  ;;  %v270_v24 = vadd.f32 %v266_v18, %v254_v3  ;;  %v271_v25 = vadd.f32 %v267_v20, %v255_v7  ;;  %p602_p13 = scmp.ne.s32.totalorder %s913_s11, %s601_s30  ;;  %s709_s27 = smov [#allocation7]  }
  0x5c   : > { %276 = vst [vmem:[%s906_s10 + $0x10] sm:$0xff] %v264_v19  ;;  %v272_v26 = vadd.f32 %v268_v21, %v256_v12  ;;  %v273_v27 = vadd.f32 %v269_v22, %v257_v16  ;;  %s605_s7 = sshll.u32 %s709_s27, 4  ;;  %s606_s7 = int_to_ptr.vmem [resolvable:$false] %s605_s7 }
  0x5d   : > { %277 = vst [vmem:[%s906_s10 + $0x18] sm:$0xff] %v265_v23  ;;  %278 = vst [vmem:[%s909_s20] sm:$0xff] %v270_v24  ;;  %p603_p12 = pnand %p602_p13, %p1024_p1  ;;  %s607_s16 = scalar_lea.vmem %s606_s7, 1024 }
  0x5e   : > { %279 = vst [vmem:[%s909_s20 + $0x8] sm:$0xff] %v271_v25  ;;  %280 = vst [vmem:[%s909_s20 + $0x10] sm:$0xff] %v272_v26  ;;  %p608_p5 = scmp.lt.s32.totalorder %s913_s11, %s606_s7  ;;  %p609_p7 = scmp.lt.s32.totalorder %s607_s16, %s601_s30 }
  0x5f   : > { %281 = vst [vmem:[%s909_s20 + $0x18] sm:$0xff] %v273_v27  ;;  %p604_p10 = pneg %p603_p12 }
  0x60   : > { %p610_p9 = por %p609_p7, %p608_p5 }
  0x62   : > { %p611_p11 = pnand %p610_p9, %p604_p10 }
  0x64   : > { %614 = shalt.err (!%p611_p11)
}
  0x65   : > { %s615_s26 = scalar_lea.hbm %s923_s17, 512  ;;  %s619_s20 = scalar_lea.hbm %s1013_s2, 1024 }
  0x66   : > { %p616_p3 = scmp.ne.s32.totalorder %s923_s17, %s615_s26  ;;  %p620_p2 = scmp.lt.u32.totalorder %s923_s17, %s1013_s2 }
  0x67   : > { %p621_p4 = scmp.lt.u32.totalorder %s619_s20, %s615_s26  ;;  %p623_p13 = scmp.lt.u32.totalorder %s615_s26, %s923_s17 }
  0x68   : > { %p617_p8 = pnand %p616_p3, %p1024_p1 }
  0x69   : > { %p622_p6 = por %p621_p4, %p620_p2 }
  0x6a   : > { %p618_p0 = pneg %p617_p8 }
  0x6b   : > { %p624_p12 = por %p623_p13, %p622_p6 }
  0x6d   : > { %p625_p10 = pnand %p624_p12, %p618_p0 }
  0x6f   : > { %628 = shalt.err (!%p625_p10)
}
  0x70   : > { %s710_s5 = smov 256   ;;  %s711_s28 = smov 16  }
  0x71   : > { %485 = dma.vmem_to_hbm [thread:$0]  (%p1024_p1), %s913_s11, 512, %s923_s17, %s283_s8, %s710_s5, %s710_s5, %s711_s28  }
  0x72   : > { %s288_s19 = scalar_lea.sflag [#allocation9], %s893_s6  ;;  %s629_s30 = scalar_lea.vmem %s916_s29, 512 }
  0x73   : > { %p630_p5 = scmp.ne.s32.totalorder %s916_s29, %s629_s30  ;;  %s712_s27 = smov [#allocation8]  }
  0x74   : > { %s633_s7 = sshll.u32 %s712_s27, 4  ;;  %s634_s7 = int_to_ptr.vmem [resolvable:$false] %s633_s7 }
  0x75   : > { %p631_p7 = pnand %p630_p5, %p1024_p1  ;;  %s635_s16 = scalar_lea.vmem %s634_s7, 1024 }
  0x76   : > { %p636_p11 = scmp.lt.s32.totalorder %s916_s29, %s634_s7  ;;  %p637_p3 = scmp.lt.s32.totalorder %s635_s16, %s629_s30 }
  0x77   : > { %p632_p9 = pneg %p631_p7 }
  0x78   : > { %p638_p8 = por %p637_p3, %p636_p11 }
  0x7a   : > { %p639_p0 = pnand %p638_p8, %p632_p9 }
  0x7c   : > { %642 = shalt.err (!%p639_p0)
}
  0x7d   : > { %s643_s11 = scalar_lea.hbm %s932_s22, 512  ;;  %s647_s26 = scalar_lea.hbm %s1014_s3, 1024 }
  0x7e   : > { %p644_p2 = scmp.ne.s32.totalorder %s932_s22, %s643_s11  ;;  %p648_p13 = scmp.lt.u32.totalorder %s932_s22, %s1014_s3 }
  0x7f   : > { %p649_p12 = scmp.lt.u32.totalorder %s647_s26, %s643_s11  ;;  %p651_p5 = scmp.lt.u32.totalorder %s643_s11, %s932_s22 }
  0x80   : > { %p645_p4 = pnand %p644_p2, %p1024_p1 }
  0x81   : > { %p650_p10 = por %p649_p12, %p648_p13 }
  0x82   : > { %p646_p6 = pneg %p645_p4 }
  0x83   : > { %p652_p7 = por %p651_p5, %p650_p10 }
  0x85   : > { %p653_p9 = pnand %p652_p7, %p646_p6 }
  0x87   : > { %656 = shalt.err (!%p653_p9)
}
  0x88   : > { %486 = dma.vmem_to_hbm [thread:$0]  (%p1024_p1), %s916_s29, 512, %s932_s22, %s288_s19, %s710_s5, %s710_s5, %s711_s28  }
  0x89 PF: > { %s334_s20 = sand.u32 1, %s691_s12   ;;  %p1025_p11 = scmp.ne.s32.totalorder %s1020_s25, 0 }
  0x8a   : > { %p1026_p3 = scmp.ge.s32.totalorder %s703_s15, 2  ;;  %s335_s4 = scalar_lea.sflag [#allocation4], %s334_s20 }
  0x8c   : > { %p497_p8 = pnand %p1026_p3, %p1025_p11 }
  0x8e   : > { %682 = dma.done.wait (!%p497_p8), %s335_s4, 512  }
  0x8f   : > { %684 = vsyncadd (!%p497_p8), %s335_s4, 4294966784  ;;  %s344_s24 = scalar_lea.sflag [#allocation9], %s334_s20 }
  0x90   : > { %686 = dma.done.wait (!%p497_p8), %s344_s24, 512  }
  0x91   : > { %688 = vsyncadd (!%p497_p8), %s344_s24, 4294966784  ;;  %p23_p1 = scmp.ge.s32.totalorder %s758_s18, 4   ;;  %s1027_s12 = smov %s695_s13 }
  0x92   : > { %s1028_s13 = smov %s699_s14  ;;  %s1029_s14 = smov %s770_s21 }
  0x93   : > { %s1030_s15 = smov %s758_s18  ;;  %25 = sbr.rel (!%p23_p1) target bundleno = 9 (0x9), region = 103 }
  0x9a   :  { %349 = vsyncpa [#allocation3], 1 }
  0x9b   :  { %351 = vsyncpa [#allocation3 + $0x1], 1 }
  0x9c   :  { %352 = vsyncpa [#allocation6], 1 }
  0x9d   :  { %354 = vsyncpa [#allocation6 + $0x1], 1 }
  0x9e   :  { %355 = vsyncpa [#allocation4], 1 }
  0x9f   :  { %357 = vsyncpa [#allocation4 + $0x1], 1 }
  0xa0   :  { %358 = vsyncpa [#allocation9], 1 }
  0xa1   :  { %360 = vsyncpa [#allocation9 + $0x1], 1 }

</bundles_post_ra>
